<compile_context>
chip_gen: v5e
topology: v5e:2x2
jax: 0.10.0
libtpu: 0.0.40
codegen_flags: <defaults>
</compile_context>

<pallas_src>
import functools

import jax
import jax.numpy as jnp
from jax.experimental import pallas as pl
from jax.experimental.pallas import tpu as pltpu


_TILE_B_MAX = 2048  # per-step batch tile; ~9 MiB double-buffered VMEM worst case


# --------------------------------------------------------------------------- #
# Kernels
# --------------------------------------------------------------------------- #
def _mlp_plain_kernel(x_ref, w1_ref, b1_ref, w2_ref, b2_ref, w3_ref, b3_ref,
                      out_ref):
    x = x_ref[...]
    h1 = jnp.tanh(
        jnp.dot(x, w1_ref[...], preferred_element_type=jnp.float32) + b1_ref[...]
    )
    h2 = jnp.tanh(
        jnp.dot(h1, w2_ref[...], preferred_element_type=jnp.float32) + b2_ref[...]
    )
    out_ref[...] = (
        jnp.dot(h2, w3_ref[...], preferred_element_type=jnp.float32) + b3_ref[...]
    ).astype(out_ref.dtype)


def _mlp_feat_kernel(x_ref, w1_ref, b1_ref, w2_ref, b2_ref, w3_ref, b3_ref,
                     out_ref, feat_ref):
    x = x_ref[...]
    h1 = jnp.tanh(
        jnp.dot(x, w1_ref[...], preferred_element_type=jnp.float32) + b1_ref[...]
    )
    h2 = jnp.tanh(
        jnp.dot(h1, w2_ref[...], preferred_element_type=jnp.float32) + b2_ref[...]
    )
    # Features written directly from h2 (VPU store): bit-exact, no identity
    # matmul, no post-kernel slicing.
    feat_ref[...] = h2.astype(feat_ref.dtype)
    out_ref[...] = (
        jnp.dot(h2, w3_ref[...], preferred_element_type=jnp.float32) + b3_ref[...]
    ).astype(out_ref.dtype)


# --------------------------------------------------------------------------- #
# pallas_call wrapper
# --------------------------------------------------------------------------- #
def _run_pallas_mlp(x, w1, b1, w2, b2, w3, b3, *, tile_b, return_features):
    batch, obs_dim = x.shape
    hidden_dim = w1.shape[1]
    act_dim = w3.shape[1]

    grid = (pl.cdiv(batch, tile_b),)

    in_specs = [
        pl.BlockSpec((tile_b, obs_dim), lambda i: (i, 0)),        # x (batch-tiled)
        pl.BlockSpec((obs_dim, hidden_dim), lambda i: (0, 0)),    # W1 (resident)
        pl.BlockSpec((1, hidden_dim), lambda i: (0, 0)),          # b1
        pl.BlockSpec((hidden_dim, hidden_dim), lambda i: (0, 0)), # W2
        pl.BlockSpec((1, hidden_dim), lambda i: (0, 0)),          # b2
        pl.BlockSpec((hidden_dim, act_dim), lambda i: (0, 0)),    # W3
        pl.BlockSpec((1, act_dim), lambda i: (0, 0)),             # b3
    ]

    flops = 2 * batch * (
        obs_dim * hidden_dim + hidden_dim * hidden_dim + hidden_dim * act_dim
    )
    transcendentals = 2 * batch * hidden_dim  # two tanh layers
    weight_bytes = 4 * (
        obs_dim * hidden_dim + hidden_dim
        + hidden_dim * hidden_dim + hidden_dim
        + hidden_dim * act_dim + act_dim
    )
    io_cols = obs_dim + act_dim + (hidden_dim if return_features else 0)
    cost = pl.CostEstimate(
        flops=flops,
        transcendentals=transcendentals,
        bytes_accessed=4 * batch * io_cols + weight_bytes,
    )

    compiler_params = pltpu.CompilerParams(
        dimension_semantics=("parallel",),
        vmem_limit_bytes=32 * 1024 * 1024,
    )

    if return_features:
        out_shape = (
            jax.ShapeDtypeStruct((batch, act_dim), jnp.float32),
            jax.ShapeDtypeStruct((batch, hidden_dim), jnp.float32),
        )
        out_specs = (
            pl.BlockSpec((tile_b, act_dim), lambda i: (i, 0)),
            pl.BlockSpec((tile_b, hidden_dim), lambda i: (i, 0)),
        )
        out, feat = pl.pallas_call(
            _mlp_feat_kernel,
            out_shape=out_shape,
            grid=grid,
            in_specs=in_specs,
            out_specs=out_specs,
            compiler_params=compiler_params,
            cost_estimate=cost,
        )(x, w1, b1, w2, b2, w3, b3)
        return out, feat

    out = pl.pallas_call(
        _mlp_plain_kernel,
        out_shape=jax.ShapeDtypeStruct((batch, act_dim), jnp.float32),
        grid=grid,
        in_specs=in_specs,
        out_specs=pl.BlockSpec((tile_b, act_dim), lambda i: (i, 0)),
        compiler_params=compiler_params,
        cost_estimate=cost,
    )(x, w1, b1, w2, b2, w3, b3)
    return out


@functools.partial(jax.jit, static_argnames=("tile_b", "return_features"))
def _forward_jit(x, w1, b1, w2, b2, w3, b3, *, tile_b, return_features):
    return _run_pallas_mlp(
        x, w1, b1, w2, b2, w3, b3, tile_b=tile_b, return_features=return_features
    )


def _pick_tile_b(batch):
    """Power-of-two tile, targeting >=2 grid steps (v7x megacore), capped.

    Bucketing keeps tile_b (a static jit arg) to a small fixed set of values
    so variable batch sizes do not cause unbounded recompiles.
    """
    target = max(8, (batch + 1) // 2)  # cdiv(batch, 2)
    tile = 8
    while tile < target and tile < _TILE_B_MAX:
        tile *= 2
    return tile


# --------------------------------------------------------------------------- #
# Module wrapper
# --------------------------------------------------------------------------- #
def _make_params(key, obs_dim, hidden_dim, act_dim):
    """Deterministic PyTorch-convention parameters: W is (out_features, in_features)."""
    ks = jax.random.split(key, 6)

    def lin(kw, kb, fan_in, fan_out):
        bound = 1.0 / jnp.sqrt(fan_in)
        w = jax.random.uniform(kw, (fan_out, fan_in), jnp.float32, -bound, bound)
        b = jax.random.uniform(kb, (fan_out,), jnp.float32, -bound, bound)
        return w, b

    w1, b1 = lin(ks[0], ks[1], obs_dim, hidden_dim)
    w2, b2 = lin(ks[2], ks[3], hidden_dim, hidden_dim)
    w3, b3 = lin(ks[4], ks[5], hidden_dim, act_dim)
    return dict(w1=w1, b1=b1, w2=w2, b2=b2, w3=w3, b3=b3)


class DPPOCompatibleSequentialPallas:
    """JAX/Pallas mirror of DPPOCompatibleSequential over the synthetic MLP."""

    def __init__(self, params):
        # One-time glue: pre-transpose W to (in, out), biases to (1, out).
        w1 = jnp.asarray(params["w1"], jnp.float32)   # (hidden, obs)
        w2 = jnp.asarray(params["w2"], jnp.float32)   # (hidden, hidden)
        w3 = jnp.asarray(params["w3"], jnp.float32)   # (act, hidden)
        self.obs_dim = w1.shape[1]
        self.hidden_dim = w1.shape[0]
        self.act_dim = w3.shape[0]

        self.w1 = w1.T
        self.b1 = jnp.asarray(params["b1"], jnp.float32).reshape(1, -1)
        self.w2 = w2.T
        self.b2 = jnp.asarray(params["b2"], jnp.float32).reshape(1, -1)
        self.w3 = w3.T
        self.b3 = jnp.asarray(params["b3"], jnp.float32).reshape(1, -1)

    def forward(self, x, return_features=False, return_actor=True,
                return_critic=True, **kwargs):
        if isinstance(x, (list, tuple)):
            x = x[0]
        x = jnp.asarray(x, jnp.float32)
        tile_b = _pick_tile_b(int(x.shape[0]))
        return _forward_jit(
            x, self.w1, self.b1, self.w2, self.b2, self.w3, self.b3,
            tile_b=tile_b, return_features=bool(return_features))

    __call__ = forward


def _reference_forward(x, params):
    """Pure-JAX reference mirroring torch.nn.Sequential semantics."""
    h1 = jnp.tanh(x @ params["w1"].T + params["b1"])
    h2 = jnp.tanh(h1 @ params["w2"].T + params["b2"])
    out = h2 @ params["w3"].T + params["b3"]
    return out, h2


if __name__ == "__main__":
    batch, obs_dim, hidden_dim, act_dim = 8, 32, 32, 8

    key = jax.random.PRNGKey(0)
    k_params, k_x = jax.random.split(key)
    params = _make_params(k_params, obs_dim, hidden_dim, act_dim)
    x = jax.random.normal(k_x, (batch, obs_dim), jnp.float32)

    model = DPPOCompatibleSequentialPallas(params)

    # return_features=False path (default forward: self.model(x)); also
    # exercises the list-unwrap branch.
    out_plain = model([x])
    out_plain = jax.block_until_ready(out_plain)

    # return_features=True path: (output, features)
    out, feat = model(x, return_features=True)
    out = jax.block_until_ready(out)
    feat = jax.block_until_ready(feat)

    # Verify against pure-JAX reference.
    ref_out, ref_feat = _reference_forward(x, params)
    assert out.shape == (batch, act_dim)
    assert feat.shape == (batch, hidden_dim)
    assert jnp.allclose(out, ref_out, atol=1e-5, rtol=1e-5)
    assert jnp.allclose(feat, ref_feat, atol=1e-5, rtol=1e-5)
    assert jnp.allclose(out_plain, ref_out, atol=1e-5, rtol=1e-5)

    # Non-tile-aligned larger batch: exercises cdiv grid + ragged last block.
    x_big = jax.random.normal(jax.random.PRNGKey(1), (1037, obs_dim), jnp.float32)
    out_big, feat_big = model(x_big, return_features=True)
    out_big = jax.block_until_ready(out_big)
    feat_big = jax.block_until_ready(feat_big)
    ref_big_out, ref_big_feat = _reference_forward(x_big, params)
    assert out_big.shape == (1037, act_dim)
    assert feat_big.shape == (1037, hidden_dim)
    assert jnp.allclose(out_big, ref_big_out, atol=1e-5, rtol=1e-5)
    assert jnp.allclose(feat_big, ref_big_feat, atol=1e-5, rtol=1e-5)

    # Default path on the big batch too.
    out_big_plain = jax.block_until_ready(model(x_big))
    assert jnp.allclose(out_big_plain, ref_big_out, atol=1e-5, rtol=1e-5)

    print("KERNEL_OK")
</pallas_src>

<mosaic_0001>
module attributes {stable_mosaic.version = 11 : i64} {
  func.func @_mlp_plain_kernel(%arg0: i32, %arg1: memref<8x32xf32, #tpu.memory_space<vmem>>, %arg2: memref<32x32xf32, #tpu.memory_space<vmem>>, %arg3: memref<1x32xf32, #tpu.memory_space<vmem>>, %arg4: memref<32x32xf32, #tpu.memory_space<vmem>>, %arg5: memref<1x32xf32, #tpu.memory_space<vmem>>, %arg6: memref<32x8xf32, #tpu.memory_space<vmem>>, %arg7: memref<1x8xf32, #tpu.memory_space<vmem>>, %arg8: memref<8x8xf32, #tpu.memory_space<vmem>>) attributes {dimension_semantics = [#tpu.dimension_semantics<parallel>], iteration_bounds = array<i64: 1>, scalar_prefetch = 0 : i64, scratch_operands = 0 : i64, tpu.core_type = #tpu.core_type<tc>, window_params = [{transform_indices = @transform_0, window_bounds = array<i64: 8, 32>}, {pipeline_mode = #tpu.pipeline_mode<synchronous>, transform_indices = @transform_1, window_bounds = array<i64: 32, 32>}, {pipeline_mode = #tpu.pipeline_mode<synchronous>, transform_indices = @transform_2, window_bounds = array<i64: 1, 32>}, {pipeline_mode = #tpu.pipeline_mode<synchronous>, transform_indices = @transform_3, window_bounds = array<i64: 32, 32>}, {pipeline_mode = #tpu.pipeline_mode<synchronous>, transform_indices = @transform_4, window_bounds = array<i64: 1, 32>}, {pipeline_mode = #tpu.pipeline_mode<synchronous>, transform_indices = @transform_5, window_bounds = array<i64: 32, 8>}, {pipeline_mode = #tpu.pipeline_mode<synchronous>, transform_indices = @transform_6, window_bounds = array<i64: 1, 8>}, {transform_indices = @transform_7, window_bounds = array<i64: 8, 8>}]} {
    %c0 = arith.constant 0 : index
    %c0_0 = arith.constant 0 : index
    %0 = vector.load %arg1[%c0, %c0_0] : memref<8x32xf32, #tpu.memory_space<vmem>>, vector<8x32xf32>
    %c0_1 = arith.constant 0 : index
    %c0_2 = arith.constant 0 : index
    %1 = vector.load %arg2[%c0_1, %c0_2] : memref<32x32xf32, #tpu.memory_space<vmem>>, vector<32x32xf32>
    %cst = arith.constant dense<0.000000e+00> : vector<8x32xf32>
    %2 = tpu.matmul %0, %1, %cst {dimension_numbers = #tpu.dot_dimension_numbers<[1], [0], [0], [1], [0, 0, 1, 1], [], []>} : vector<8x32xf32>, vector<32x32xf32>, vector<8x32xf32> -> vector<8x32xf32>
    %c0_3 = arith.constant 0 : index
    %c0_4 = arith.constant 0 : index
    %3 = vector.load %arg3[%c0_3, %c0_4] : memref<1x32xf32, #tpu.memory_space<vmem>>, vector<1x32xf32>
    %4 = vector.broadcast %3 : vector<1x32xf32> to vector<8x32xf32>
    %5 = arith.addf %2, %4 : vector<8x32xf32>
    %6 = math.tanh %5 : vector<8x32xf32>
    %c0_5 = arith.constant 0 : index
    %c0_6 = arith.constant 0 : index
    %7 = vector.load %arg4[%c0_5, %c0_6] : memref<32x32xf32, #tpu.memory_space<vmem>>, vector<32x32xf32>
    %cst_7 = arith.constant dense<0.000000e+00> : vector<8x32xf32>
    %8 = tpu.matmul %6, %7, %cst_7 {dimension_numbers = #tpu.dot_dimension_numbers<[1], [0], [0], [1], [0, 0, 1, 1], [], []>} : vector<8x32xf32>, vector<32x32xf32>, vector<8x32xf32> -> vector<8x32xf32>
    %c0_8 = arith.constant 0 : index
    %c0_9 = arith.constant 0 : index
    %9 = vector.load %arg5[%c0_8, %c0_9] : memref<1x32xf32, #tpu.memory_space<vmem>>, vector<1x32xf32>
    %10 = vector.broadcast %9 : vector<1x32xf32> to vector<8x32xf32>
    %11 = arith.addf %8, %10 : vector<8x32xf32>
    %12 = math.tanh %11 : vector<8x32xf32>
    %c0_10 = arith.constant 0 : index
    %c0_11 = arith.constant 0 : index
    %13 = vector.load %arg6[%c0_10, %c0_11] : memref<32x8xf32, #tpu.memory_space<vmem>>, vector<32x8xf32>
    %cst_12 = arith.constant dense<0.000000e+00> : vector<8x8xf32>
    %14 = tpu.matmul %12, %13, %cst_12 {dimension_numbers = #tpu.dot_dimension_numbers<[1], [0], [0], [1], [0, 0, 1, 1], [], []>} : vector<8x32xf32>, vector<32x8xf32>, vector<8x8xf32> -> vector<8x8xf32>
    %c0_13 = arith.constant 0 : index
    %c0_14 = arith.constant 0 : index
    %15 = vector.load %arg7[%c0_13, %c0_14] : memref<1x8xf32, #tpu.memory_space<vmem>>, vector<1x8xf32>
    %16 = vector.broadcast %15 : vector<1x8xf32> to vector<8x8xf32>
    %17 = arith.addf %14, %16 : vector<8x8xf32>
    %c0_15 = arith.constant 0 : index
    %c0_16 = arith.constant 0 : index
    %18 = vector.load %arg8[%c0_15, %c0_16] : memref<8x8xf32, #tpu.memory_space<vmem>>, vector<8x8xf32>
    tpu.vector_store %arg8[%c0_15, %c0_16], %17 {strides = array<i32>} : memref<8x8xf32, #tpu.memory_space<vmem>>, vector<8x8xf32>,
    return
  }
  func.func @transform_0(%arg0: i32) -> (i32, i32) {
    %c0_i32 = arith.constant 0 : i32
    %c0_i32_0 = arith.constant 0 : i32
    return %arg0, %c0_i32 : i32, i32
  }
  func.func @transform_1(%arg0: i32) -> (i32, i32) {
    %c0_i32 = arith.constant 0 : i32
    %c0_i32_0 = arith.constant 0 : i32
    %c0_i32_1 = arith.constant 0 : i32
    return %c0_i32, %c0_i32_0 : i32, i32
  }
  func.func @transform_2(%arg0: i32) -> (i32, i32) {
    %c0_i32 = arith.constant 0 : i32
    %c0_i32_0 = arith.constant 0 : i32
    %c0_i32_1 = arith.constant 0 : i32
    return %c0_i32, %c0_i32_0 : i32, i32
  }
  func.func @transform_3(%arg0: i32) -> (i32, i32) {
    %c0_i32 = arith.constant 0 : i32
    %c0_i32_0 = arith.constant 0 : i32
    %c0_i32_1 = arith.constant 0 : i32
    return %c0_i32, %c0_i32_0 : i32, i32
  }
  func.func @transform_4(%arg0: i32) -> (i32, i32) {
    %c0_i32 = arith.constant 0 : i32
    %c0_i32_0 = arith.constant 0 : i32
    %c0_i32_1 = arith.constant 0 : i32
    return %c0_i32, %c0_i32_0 : i32, i32
  }
  func.func @transform_5(%arg0: i32) -> (i32, i32) {
    %c0_i32 = arith.constant 0 : i32
    %c0_i32_0 = arith.constant 0 : i32
    %c0_i32_1 = arith.constant 0 : i32
    return %c0_i32, %c0_i32_0 : i32, i32
  }
  func.func @transform_6(%arg0: i32) -> (i32, i32) {
    %c0_i32 = arith.constant 0 : i32
    %c0_i32_0 = arith.constant 0 : i32
    %c0_i32_1 = arith.constant 0 : i32
    return %c0_i32, %c0_i32_0 : i32, i32
  }
  func.func @transform_7(%arg0: i32) -> (i32, i32) {
    %c0_i32 = arith.constant 0 : i32
    %c0_i32_0 = arith.constant 0 : i32
    return %arg0, %c0_i32 : i32, i32
  }
}

</mosaic_0001>

<bundles_post_ra>
// kernel: _forward_jit.1
= control target key start
LH: loop header
LB: loop body
LE: loop exit
PB: predicated region body
PF: predicated region fallthrough
CT: control target
= control target key end

     0   :  { %12 = vsyncpa [#allocation3], 0  ;;  %s314_s0 = inlined_call_operand.vmem [shape: f32[8,32], index: 0, kind: input, shape index: {}]   ;;  %s315_s1 = inlined_call_operand.vmem [shape: f32[32,32], index: 1, kind: input, shape index: {}]   ;;  %s316_s2 = inlined_call_operand.vmem [shape: f32[1,32], index: 2, kind: input, shape index: {}]   ;;  %s317_s3 = inlined_call_operand.hbm [shape: f32[32,32], index: 3, kind: input, shape index: {}]   ;;  %s318_s4 = inlined_call_operand.vmem [shape: f32[1,32], index: 4, kind: input, shape index: {}]   ;;  %s319_s5 = inlined_call_operand.vmem [shape: f32[32,8], index: 5, kind: input, shape index: {}]   ;;  %s320_s6 = inlined_call_operand.vmem [shape: f32[1,8], index: 6, kind: input, shape index: {}]   ;;  %s321_s7 = inlined_call_operand.hbm [shape: f32[8,8], index: 7, kind: output, shape index: {}]  }
   0x1   :  { %13 = vsyncpa [#allocation4], 0  ;;  %s24_s26 = sshll.u32 %s317_s3, 4  ;;  %s225_s27 = smov [#allocation2]   ;;  %s25_s26 = int_to_ptr.hbm [resolvable:$true] %s24_s26 }
   0x2   :  { %s26_s28 = sshll.u32 %s225_s27, 4  ;;  %s226_s29 = smov 128   ;;  %s27_s28 = int_to_ptr.vmem [resolvable:$true] %s26_s28 }
   0x3   :  { %s227_s30 = smov 8  }
   0x4   :  { %32 = dma.hbm_to_vmem [thread:$0]  %s25_s26, 512, %s27_s28, [#allocation3], %s226_s29, %s226_s29, %s227_s30  }
   0x5   :  { %221 = dma.done.wait [#allocation3], 512  }
   0x6   :  { %222 = vsyncadd [#allocation3], 4294966784  ;;  %v47_v0 = vld [vmem:[%s315_s1 + $0x18] sm:$0xff]  ;;  %v46_v1 = vld [vmem:[%s315_s1 + $0x10] sm:$0xff]  ;;  %vm52_vm0 = vcmask 261120   ;;  %s228_s28 = smov [#allocation5]  }
   0x7   :  { %68 = vmatpush.msra.mxu0 %v47_v0  ;;  %v45_v2 = vld [vmem:[%s315_s1 + $0x8] sm:$0xff]  ;;  %v44_v3 = vld [vmem:[%s315_s1] sm:$0xff]  ;;  %v80_v5 = vld [vmem:[#allocation2 + $0x18] sm:$0xff]  ;;  %s147_s29 = sshll.u32 %s228_s28, 4  ;;  %s149_s8 = sshll.u32 %s321_s7, 4  ;;  %vm140_vm1 = vcmask 64512   ;;  %s148_s29 = int_to_ptr.vmem [resolvable:$true] %s147_s29  ;;  %s150_s8 = int_to_ptr.hbm [resolvable:$true] %s149_s8 }
   0x8   :  { %v43_v4 = vld [vmem:[%s314_s0] sm:$0xff]  ;;  %100 = vmatpush.msra.mxu1 %v80_v5  ;;  %v79_v6 = vld [vmem:[#allocation2 + $0x10] sm:$0xff]  ;;  %v78_v7 = vld [vmem:[#allocation2 + $0x8] sm:$0xff] }
   0x9   :  { %69 = vmatpush.msra.mxu0 %v46_v1  ;;  %v77_v8 = vld [vmem:[#allocation2] sm:$0xff]  ;;  %v112_v13 = vld [vmem:[%s319_s5 + $0x18] sm:$0xff]  ;;  %v111_v14 = vld [vmem:[%s319_s5 + $0x10] sm:$0xff] }
   0xa   :  { %101 = vmatpush.msra.mxu1 %v79_v6  ;;  %v166_v9 = vld [vmem:[%s316_s2] ss:$0 sm:$0xff]  ;;  %132 = vmatpush.msra.mxu2 %v112_v13  ;;  %v110_v15 = vld [vmem:[%s319_s5 + $0x8] sm:$0xff] }
   0xb   :  { %70 = vmatpush.msra.mxu0 %v45_v2  ;;  %v109_v16 = vld [vmem:[%s319_s5] sm:$0xff] }
   0xc   :  { %102 = vmatpush.msra.mxu1 %v78_v7  ;;  %133 = vmatpush.msra.mxu2 %v111_v14  ;;  %v167_v17 = vld [vmem:[%s318_s4] ss:$0 sm:$0xff] }
   0xd   :  { %71 = vmatpush.msra.mxu0 %v44_v3  ;;  %v168_v21 = vld [vmem:[%s320_s6] ss:$0 sm:$0xff] }
   0xe   :  { %159 = vmatmul.msk.f32.vlgmr.msra.gmra.mxu0 %vm52_vm0, %v43_v4  ;;  %103 = vmatpush.msra.mxu1 %v77_v8 }
   0xf   :  { %134 = vmatpush.msra.mxu2 %v110_v15 }
  0x11   :  { %135 = vmatpush.msra.mxu2 %v109_v16 }
  0x8b   :  { %v73_v10 = vpop.f32.mrf.mxu0 }
  0x8c   :  { %v74_v11 = vadd.f32 %v166_v9, %v73_v10 }
  0x8e   :  { %169 = vtanh.f32 %v74_v11 }
  0x94   :  { %v170_v12 = vpop.eup %169 }
  0x95   :  { %160 = vmatmul.msk.f32.vlgmr.msra.gmra.mxu1 %vm52_vm0, %v170_v12 }
 0x112   :  { %v105_v18 = vpop.f32.mrf.mxu1 }
 0x113   :  { %v106_v19 = vadd.f32 %v167_v17, %v105_v18 }
 0x115   :  { %171 = vtanh.f32 %v106_v19 }
 0x11b   :  { %v172_v20 = vpop.eup %171 }
 0x11c   :  { %161 = vmatmul.msk.f32.vlgmr.msra.gmra.mxu2 %vm52_vm0, %v172_v20 }
 0x19f   :  { %v137_v22 = vpop.f32.mrf.mxu2 }
 0x1a0   :  { %v138_v23 = vadd.f32 %v168_v21, %v137_v22 }
 0x1a2   :  { %141 = vst.msk [vmem:[#allocation5] sm:$0xff] %vm140_vm1, %v138_v23 }
 0x1a3   :  { %152 = dma.vmem_to_hbm [thread:$0]  %s148_s29, 128, %s150_s8, [#allocation4]  }
 0x1a4   :  { %223 = dma.done.wait [#allocation4], 128  }
 0x1a5   :  { %224 = vsyncadd [#allocation4], 4294967168 }
 0x1a6   :  { %157 = vsyncpa [#allocation3], 1 }
 0x1a7   :  { %158 = vsyncpa [#allocation4], 1 }

</bundles_post_ra>
